<compile_context>
chip_gen: v5e
topology: v5e:2x2
jax: 0.10.0
libtpu: 0.0.40
codegen_flags: <defaults>
</compile_context>

<pallas_src>
import jax
import jax.numpy as jnp
from jax.experimental import pallas as pl
from jax.experimental.pallas import tpu as pltpu

INPUT_DIM = 64
ENCODING_DIM = 32
H1 = 256
H2 = 128
OUT_PAD = 128               # lane-dense padded output width (>= INPUT_DIM)
DEFAULT_BATCH_TILE = 2048   # sweep 1024-4096

# Offsets into the concatenated bias array (all multiples of 128 -> clean lane slices).
_B_OFF1 = 0
_B_OFF2 = H1                        # 256
_B_OFF34 = H1 + H2                  # 384
_B_OFF5 = H1 + 2 * H2               # 512
_B_OFF6 = 2 * H1 + 2 * H2           # 768
_B_TOTAL = 2 * H1 + 2 * H2 + OUT_PAD  # 896


def _round_up(n, m):
    return ((n + m - 1) // m) * m


def _fuse_34(w3, b3, w4, b4):
    # Encoder's last Linear feeds the decoder's first Linear with no
    # activation in between (Dropout is identity in eval mode), so the pair
    # folds into a single affine map: y = x @ (W3 @ W4) + (b3 @ W4 + b4).
    w34 = jnp.dot(w3, w4, preferred_element_type=jnp.float32)
    b34 = jnp.dot(b3, w4, preferred_element_type=jnp.float32) + b4
    return w34, b34


def autoencoder_kernel(x_ref, w1_ref, w2_ref, w34_ref, w5_ref, w6_ref, b_ref, o_ref):
    # Cast the f32 input tile to bf16 in-kernel (saves a wrapper-side HBM pass).
    h = x_ref[...].astype(jnp.bfloat16)                                   # (tb, 64)

    def dense(h_bf16, w_ref_, b_lo, b_hi, relu):
        # bf16 x bf16 on the MXU, f32 accumulation; bias add / ReLU in f32.
        y = jnp.dot(h_bf16, w_ref_[...], preferred_element_type=jnp.float32)
        y = y + b_ref[:, b_lo:b_hi]
        if relu:
            y = jnp.maximum(y, 0.0)
        return y

    h = dense(h, w1_ref, _B_OFF1, _B_OFF2, True).astype(jnp.bfloat16)     # (tb, 256)
    h = dense(h, w2_ref, _B_OFF2, _B_OFF34, True).astype(jnp.bfloat16)    # (tb, 128)
    # Fused encoder-Linear3 + decoder-Linear1 (ReLU belongs to the decoder side).
    h = dense(h, w34_ref, _B_OFF34, _B_OFF5, True).astype(jnp.bfloat16)   # (tb, 128)
    h = dense(h, w5_ref, _B_OFF5, _B_OFF6, True).astype(jnp.bfloat16)     # (tb, 256)
    y = dense(h, w6_ref, _B_OFF6, _B_TOTAL, False)                        # (tb, 128) lane-padded
    o_ref[...] = y.astype(o_ref.dtype)
    # TODO(synk): Dropout(0.2) is identity here (eval mode); training-mode dropout
    # would use pltpu.prng_seed / pltpu.prng_random_bits masks.


def _prep_params(params):
    """Fuse layers 3&4, pad the final layer to OUT_PAD lanes, cast weights to
    bf16 and concatenate all biases into one (1, 896) f32 array.

    params: list of 6 (W_t, b) pairs; W_t is (in, out) f32, b is (1, out) f32.
    Returns (w1, w2, w34, w5, w6p, b_all).
    """
    (w1, b1), (w2, b2), (w3, b3), (w4, b4), (w5, b5), (w6, b6) = params

    w34, b34 = _fuse_34(w3, b3, w4, b4)

    pad = OUT_PAD - w6.shape[1]
    # Padded output lanes have zero weights + zero bias -> extra columns are
    # exactly zero and are sliced off wrapper-side; result is bit-identical.
    w6p = jnp.pad(w6, ((0, 0), (0, pad))) if pad > 0 else w6
    b6p = jnp.pad(b6, ((0, 0), (0, pad))) if pad > 0 else b6

    b_all = jnp.concatenate(
        [b1, b2, b34, b5, b6p], axis=1).astype(jnp.float32)               # (1, 896)

    to_bf16 = lambda a: a.astype(jnp.bfloat16)
    return to_bf16(w1), to_bf16(w2), to_bf16(w34), to_bf16(w5), to_bf16(w6p), b_all


def autoencoder_forward(x, params, batch_tile=DEFAULT_BATCH_TILE):
    """x: (B, INPUT_DIM) float.  params: list of 6 (W_t, b) pairs, W_t is (in, out)."""
    B, D = x.shape
    assert D == INPUT_DIM

    w1, w2, w34, w5, w6, b_all = _prep_params(params)

    # --- batch tiling -------------------------------------------------------
    Bp8 = _round_up(max(B, 8), 8)
    if Bp8 <= batch_tile:
        # One maximal tile: best on single-TC v5e/v6e; for v7x a batch this
        # small is overhead-dominated anyway, so we don't split it.
        tb = Bp8
    else:
        # Large batch: an even number of equal-row tiles keeps v7x's two
        # TensorCores balanced under the "parallel" batch axis.
        steps = _round_up(pl.cdiv(Bp8, batch_tile), 2)
        tb = _round_up(pl.cdiv(Bp8, steps), 8)
    Bp = _round_up(Bp8, tb)
    grid_b = Bp // tb

    x_in = x.astype(jnp.float32)
    if Bp != B:
        x_in = jnp.pad(x_in, ((0, Bp - B), (0, 0)))   # remainder-only pad

    # Weights/biases are resident across the batch grid (constant index_map);
    # x / out are tiled along the batch axis.
    consts = (w1, w2, w34, w5, w6, b_all)
    in_specs = [pl.BlockSpec((tb, D), lambda i: (i, 0))]
    in_specs += [pl.BlockSpec(a.shape, lambda i: (0, 0)) for a in consts]
    out_specs = pl.BlockSpec((tb, OUT_PAD), lambda i: (i, 0))

    flops = 2 * Bp * (D * H1 + H1 * H2 + H2 * H2 + H2 * H1 + H1 * OUT_PAD)
    weight_bytes = sum(int(a.size) * a.dtype.itemsize for a in consts)
    bytes_accessed = Bp * (D * 4 + OUT_PAD * 4) + weight_bytes

    out = pl.pallas_call(
        autoencoder_kernel,
        out_shape=jax.ShapeDtypeStruct((Bp, OUT_PAD), jnp.float32),
        grid_spec=pltpu.PrefetchScalarGridSpec(
            num_scalar_prefetch=0,
            grid=(grid_b,),
            in_specs=in_specs,
            out_specs=out_specs,
        ),
        compiler_params=pltpu.CompilerParams(
            dimension_semantics=("parallel",),
        ),
        cost_estimate=pl.CostEstimate(
            flops=flops, bytes_accessed=bytes_accessed, transcendentals=0),
    )(x_in, *consts)

    return out[:B, :INPUT_DIM]


def init_params(key, input_dim=INPUT_DIM, encoding_dim=ENCODING_DIM):
    """Deterministic init mirroring nn.Linear default (U[-1/sqrt(fan_in), +])."""
    dims = [
        (input_dim, H1), (H1, H2), (H2, encoding_dim),     # encoder
        (encoding_dim, H2), (H2, H1), (H1, input_dim),     # decoder
    ]
    params = []
    for (fan_in, fan_out) in dims:
        key, kw, kb = jax.random.split(key, 3)
        bound = 1.0 / jnp.sqrt(fan_in)
        # Stored already transposed: (in, out) so the kernel does x @ W.
        w_t = jax.random.uniform(kw, (fan_in, fan_out), jnp.float32, -bound, bound)
        b = jax.random.uniform(kb, (1, fan_out), jnp.float32, -bound, bound)
        params.append((w_t, b))
    return params


def reference_forward_f32(x, params):
    """Pure-f32 reference matching the PyTorch module in eval mode."""
    h = x.astype(jnp.float32)
    for idx, (w, b) in enumerate(params):
        h = jnp.dot(h, w) + b
        if idx not in (2, 5):   # ReLU after every Linear except encoder/decoder final
            h = jnp.maximum(h, 0.0)
    return h


def reference_forward_kernel_math(x, params):
    """Mirrors the kernel's math exactly: fused layers 3&4, bf16 operands, f32 accum."""
    (w1, b1), (w2, b2), (w3, b3), (w4, b4), (w5, b5), (w6, b6) = params
    w34, b34 = _fuse_34(w3, b3, w4, b4)
    layers = [(w1, b1, True), (w2, b2, True), (w34, b34, True),
              (w5, b5, True), (w6, b6, False)]
    h = x.astype(jnp.float32)
    for w, b, relu in layers:
        y = jnp.dot(h.astype(jnp.bfloat16), w.astype(jnp.bfloat16),
                    preferred_element_type=jnp.float32) + b
        h = jnp.maximum(y, 0.0) if relu else y
    return h


if __name__ == "__main__":
    key = jax.random.PRNGKey(0)
    kx, kp = jax.random.split(key)
    params = init_params(kp)

    for B in (16, 5):   # 16: no pad path; 5: remainder-pad path
        x = jax.random.normal(jax.random.fold_in(kx, B), (B, INPUT_DIM), jnp.float32)
        out = jax.block_until_ready(autoencoder_forward(x, params))
        assert out.shape == (B, INPUT_DIM)

        ref_exact = reference_forward_kernel_math(x, params)
        ref_f32 = reference_forward_f32(x, params)
        err_exact = float(jnp.max(jnp.abs(out - ref_exact)))
        err_f32 = float(jnp.max(jnp.abs(out - ref_f32)))
        assert jnp.allclose(out, ref_exact, atol=2e-3, rtol=2e-3), err_exact
        assert jnp.allclose(out, ref_f32, atol=2e-2, rtol=2e-2), err_f32

    print("KERNEL_OK")
</pallas_src>

<mosaic_0001>
module attributes {stable_mosaic.version = 11 : i64} {
  func.func @autoencoder_kernel(%arg0: i32, %arg1: memref<16x64xf32, #tpu.memory_space<vmem>>, %arg2: memref<64x256xbf16, #tpu.memory_space<vmem>>, %arg3: memref<256x128xbf16, #tpu.memory_space<vmem>>, %arg4: memref<128x128xbf16, #tpu.memory_space<vmem>>, %arg5: memref<128x256xbf16, #tpu.memory_space<vmem>>, %arg6: memref<256x128xbf16, #tpu.memory_space<vmem>>, %arg7: memref<1x896xf32, #tpu.memory_space<vmem>>, %arg8: memref<16x128xf32, #tpu.memory_space<vmem>>) attributes {dimension_semantics = [#tpu.dimension_semantics<parallel>], iteration_bounds = array<i64: 1>, scalar_prefetch = 0 : i64, scratch_operands = 0 : i64, tpu.core_type = #tpu.core_type<tc>, window_params = [{transform_indices = @transform_0, window_bounds = array<i64: 16, 64>}, {pipeline_mode = #tpu.pipeline_mode<synchronous>, transform_indices = @transform_1, window_bounds = array<i64: 64, 256>}, {pipeline_mode = #tpu.pipeline_mode<synchronous>, transform_indices = @transform_2, window_bounds = array<i64: 256, 128>}, {pipeline_mode = #tpu.pipeline_mode<synchronous>, transform_indices = @transform_3, window_bounds = array<i64: 128, 128>}, {pipeline_mode = #tpu.pipeline_mode<synchronous>, transform_indices = @transform_4, window_bounds = array<i64: 128, 256>}, {pipeline_mode = #tpu.pipeline_mode<synchronous>, transform_indices = @transform_5, window_bounds = array<i64: 256, 128>}, {pipeline_mode = #tpu.pipeline_mode<synchronous>, transform_indices = @transform_6, window_bounds = array<i64: 1, 896>}, {transform_indices = @transform_7, window_bounds = array<i64: 16, 128>}]} {
    %c0 = arith.constant 0 : index
    %c0_0 = arith.constant 0 : index
    %0 = vector.load %arg1[%c0, %c0_0] : memref<16x64xf32, #tpu.memory_space<vmem>>, vector<16x64xf32>
    %1 = arith.truncf %0 : vector<16x64xf32> to vector<16x64xbf16>
    %c0_1 = arith.constant 0 : index
    %c0_2 = arith.constant 0 : index
    %2 = vector.load %arg2[%c0_1, %c0_2] : memref<64x256xbf16, #tpu.memory_space<vmem>>, vector<64x256xbf16>
    %cst = arith.constant dense<0.000000e+00> : vector<16x256xf32>
    %3 = tpu.matmul %1, %2, %cst {dimension_numbers = #tpu.dot_dimension_numbers<[1], [0], [0], [1], [0, 0, 1, 1], [], []>} : vector<16x64xbf16>, vector<64x256xbf16>, vector<16x256xf32> -> vector<16x256xf32>
    %c0_3 = arith.constant 0 : index
    %c0_4 = arith.constant 0 : index
    %4 = vector.load %arg7[%c0_3, %c0_4] : memref<1x896xf32, #tpu.memory_space<vmem>>, vector<1x256xf32>
    %5 = vector.broadcast %4 : vector<1x256xf32> to vector<16x256xf32>
    %6 = arith.addf %3, %5 : vector<16x256xf32>
    %cst_5 = arith.constant 0.000000e+00 : f32
    %7 = vector.broadcast %cst_5 : f32 to vector<16x256xf32>
    %8 = arith.maximumf %6, %7 : vector<16x256xf32>
    %9 = arith.truncf %8 : vector<16x256xf32> to vector<16x256xbf16>
    %c0_6 = arith.constant 0 : index
    %c0_7 = arith.constant 0 : index
    %10 = vector.load %arg3[%c0_6, %c0_7] : memref<256x128xbf16, #tpu.memory_space<vmem>>, vector<256x128xbf16>
    %cst_8 = arith.constant dense<0.000000e+00> : vector<16x128xf32>
    %11 = tpu.matmul %9, %10, %cst_8 {dimension_numbers = #tpu.dot_dimension_numbers<[1], [0], [0], [1], [0, 0, 1, 1], [], []>} : vector<16x256xbf16>, vector<256x128xbf16>, vector<16x128xf32> -> vector<16x128xf32>
    %c0_9 = arith.constant 0 : index
    %c256 = arith.constant 256 : index
    %12 = vector.load %arg7[%c0_9, %c256] : memref<1x896xf32, #tpu.memory_space<vmem>>, vector<1x128xf32>
    %13 = vector.broadcast %12 : vector<1x128xf32> to vector<16x128xf32>
    %14 = arith.addf %11, %13 : vector<16x128xf32>
    %cst_10 = arith.constant 0.000000e+00 : f32
    %15 = vector.broadcast %cst_10 : f32 to vector<16x128xf32>
    %16 = arith.maximumf %14, %15 : vector<16x128xf32>
    %17 = arith.truncf %16 : vector<16x128xf32> to vector<16x128xbf16>
    %c0_11 = arith.constant 0 : index
    %c0_12 = arith.constant 0 : index
    %18 = vector.load %arg4[%c0_11, %c0_12] : memref<128x128xbf16, #tpu.memory_space<vmem>>, vector<128x128xbf16>
    %cst_13 = arith.constant dense<0.000000e+00> : vector<16x128xf32>
    %19 = tpu.matmul %17, %18, %cst_13 {dimension_numbers = #tpu.dot_dimension_numbers<[1], [0], [0], [1], [0, 0, 1, 1], [], []>} : vector<16x128xbf16>, vector<128x128xbf16>, vector<16x128xf32> -> vector<16x128xf32>
    %c0_14 = arith.constant 0 : index
    %c384 = arith.constant 384 : index
    %20 = vector.load %arg7[%c0_14, %c384] : memref<1x896xf32, #tpu.memory_space<vmem>>, vector<1x128xf32>
    %21 = vector.broadcast %20 : vector<1x128xf32> to vector<16x128xf32>
    %22 = arith.addf %19, %21 : vector<16x128xf32>
    %cst_15 = arith.constant 0.000000e+00 : f32
    %23 = vector.broadcast %cst_15 : f32 to vector<16x128xf32>
    %24 = arith.maximumf %22, %23 : vector<16x128xf32>
    %25 = arith.truncf %24 : vector<16x128xf32> to vector<16x128xbf16>
    %c0_16 = arith.constant 0 : index
    %c0_17 = arith.constant 0 : index
    %26 = vector.load %arg5[%c0_16, %c0_17] : memref<128x256xbf16, #tpu.memory_space<vmem>>, vector<128x256xbf16>
    %cst_18 = arith.constant dense<0.000000e+00> : vector<16x256xf32>
    %27 = tpu.matmul %25, %26, %cst_18 {dimension_numbers = #tpu.dot_dimension_numbers<[1], [0], [0], [1], [0, 0, 1, 1], [], []>} : vector<16x128xbf16>, vector<128x256xbf16>, vector<16x256xf32> -> vector<16x256xf32>
    %c0_19 = arith.constant 0 : index
    %c512 = arith.constant 512 : index
    %28 = vector.load %arg7[%c0_19, %c512] : memref<1x896xf32, #tpu.memory_space<vmem>>, vector<1x256xf32>
    %29 = vector.broadcast %28 : vector<1x256xf32> to vector<16x256xf32>
    %30 = arith.addf %27, %29 : vector<16x256xf32>
    %cst_20 = arith.constant 0.000000e+00 : f32
    %31 = vector.broadcast %cst_20 : f32 to vector<16x256xf32>
    %32 = arith.maximumf %30, %31 : vector<16x256xf32>
    %33 = arith.truncf %32 : vector<16x256xf32> to vector<16x256xbf16>
    %c0_21 = arith.constant 0 : index
    %c0_22 = arith.constant 0 : index
    %34 = vector.load %arg6[%c0_21, %c0_22] : memref<256x128xbf16, #tpu.memory_space<vmem>>, vector<256x128xbf16>
    %cst_23 = arith.constant dense<0.000000e+00> : vector<16x128xf32>
    %35 = tpu.matmul %33, %34, %cst_23 {dimension_numbers = #tpu.dot_dimension_numbers<[1], [0], [0], [1], [0, 0, 1, 1], [], []>} : vector<16x256xbf16>, vector<256x128xbf16>, vector<16x128xf32> -> vector<16x128xf32>
    %c0_24 = arith.constant 0 : index
    %c768 = arith.constant 768 : index
    %36 = vector.load %arg7[%c0_24, %c768] : memref<1x896xf32, #tpu.memory_space<vmem>>, vector<1x128xf32>
    %37 = vector.broadcast %36 : vector<1x128xf32> to vector<16x128xf32>
    %38 = arith.addf %35, %37 : vector<16x128xf32>
    %c0_25 = arith.constant 0 : index
    %c0_26 = arith.constant 0 : index
    %39 = vector.load %arg8[%c0_25, %c0_26] : memref<16x128xf32, #tpu.memory_space<vmem>>, vector<16x128xf32>
    tpu.vector_store %arg8[%c0_25, %c0_26], %38 {strides = array<i32>} : memref<16x128xf32, #tpu.memory_space<vmem>>, vector<16x128xf32>,
    return
  }
  func.func @transform_0(%arg0: i32) -> (i32, i32) {
    %c0_i32 = arith.constant 0 : i32
    %c0_i32_0 = arith.constant 0 : i32
    return %arg0, %c0_i32 : i32, i32
  }
  func.func @transform_1(%arg0: i32) -> (i32, i32) {
    %c0_i32 = arith.constant 0 : i32
    %c0_i32_0 = arith.constant 0 : i32
    %c0_i32_1 = arith.constant 0 : i32
    return %c0_i32, %c0_i32_0 : i32, i32
  }
  func.func @transform_2(%arg0: i32) -> (i32, i32) {
    %c0_i32 = arith.constant 0 : i32
    %c0_i32_0 = arith.constant 0 : i32
    %c0_i32_1 = arith.constant 0 : i32
    return %c0_i32, %c0_i32_0 : i32, i32
  }
  func.func @transform_3(%arg0: i32) -> (i32, i32) {
    %c0_i32 = arith.constant 0 : i32
    %c0_i32_0 = arith.constant 0 : i32
    %c0_i32_1 = arith.constant 0 : i32
    return %c0_i32, %c0_i32_0 : i32, i32
  }
  func.func @transform_4(%arg0: i32) -> (i32, i32) {
    %c0_i32 = arith.constant 0 : i32
    %c0_i32_0 = arith.constant 0 : i32
    %c0_i32_1 = arith.constant 0 : i32
    return %c0_i32, %c0_i32_0 : i32, i32
  }
  func.func @transform_5(%arg0: i32) -> (i32, i32) {
    %c0_i32 = arith.constant 0 : i32
    %c0_i32_0 = arith.constant 0 : i32
    %c0_i32_1 = arith.constant 0 : i32
    return %c0_i32, %c0_i32_0 : i32, i32
  }
  func.func @transform_6(%arg0: i32) -> (i32, i32) {
    %c0_i32 = arith.constant 0 : i32
    %c0_i32_0 = arith.constant 0 : i32
    %c0_i32_1 = arith.constant 0 : i32
    return %c0_i32, %c0_i32_0 : i32, i32
  }
  func.func @transform_7(%arg0: i32) -> (i32, i32) {
    %c0_i32 = arith.constant 0 : i32
    %c0_i32_0 = arith.constant 0 : i32
    return %arg0, %c0_i32 : i32, i32
  }
}

</mosaic_0001>

<bundles_post_ra>
// kernel: tpu_custom_call.1
= control target key start
LH: loop header
LB: loop body
LE: loop exit
PB: predicated region body
PF: predicated region fallthrough
CT: control target
= control target key end

     0   :  { %12 = vsyncpa [#allocation3], 0  ;;  %s1427_s0 = inlined_call_operand.hbm [shape: f32[16,64], index: 0, kind: input, shape index: {}]   ;;  %s1428_s1 = inlined_call_operand.hbm [shape: bf16[64,256], index: 1, kind: input, shape index: {}]   ;;  %s1429_s2 = inlined_call_operand.hbm [shape: bf16[256,128], index: 2, kind: input, shape index: {}]   ;;  %s1430_s3 = inlined_call_operand.hbm [shape: bf16[128,128], index: 3, kind: input, shape index: {}]   ;;  %s1431_s4 = inlined_call_operand.hbm [shape: bf16[128,256], index: 4, kind: input, shape index: {}]   ;;  %s1432_s5 = inlined_call_operand.hbm [shape: bf16[256,128], index: 5, kind: input, shape index: {}]   ;;  %s1433_s6 = inlined_call_operand.hbm [shape: f32[1,896], index: 6, kind: input, shape index: {}]   ;;  %s1434_s7 = inlined_call_operand.hbm [shape: f32[16,128], index: 7, kind: output, shape index: {}]  }
   0x1   :  { %13 = vsyncpa [#allocation6], 0 }
   0x2   :  { %14 = vsyncpa [#allocation9], 0 }
   0x3   :  { %15 = vsyncpa [#allocation12], 0 }
   0x4   :  { %16 = vsyncpa [#allocation4], 0  ;;  %s34_s26 = sshll.u32 %s1428_s1, 4  ;;  %s1337_s27 = smov [#allocation5]   ;;  %s35_s26 = int_to_ptr.hbm [resolvable:$true] %s34_s26 }
   0x5   :  { %s36_s28 = sshll.u32 %s1337_s27, 4  ;;  %s1338_s29 = smov 128   ;;  %s37_s28 = int_to_ptr.vmem [resolvable:$true] %s36_s28 }
   0x6   :  { %s1339_s30 = smov 8   ;;  %s60_s10 = sshll.u32 %s1430_s3, 4  ;;  %s61_s10 = int_to_ptr.hbm [resolvable:$true] %s60_s10 }
   0x7   :  { %42 = dma.hbm_to_vmem [thread:$0]  %s35_s26, 1024, %s37_s28, [#allocation6], %s1338_s29, %s1338_s29, %s1339_s30  }
   0x8   :  { %s1340_s11 = smov [#allocation8]   ;;  %s86_s1 = sshll.u32 %s1432_s5, 4  ;;  %s87_s1 = int_to_ptr.hbm [resolvable:$true] %s86_s1 }
   0x9   :  { %s62_s12 = sshll.u32 %s1340_s11, 4  ;;  %s1341_s15 = smov 64   ;;  %s63_s12 = int_to_ptr.vmem [resolvable:$true] %s62_s12 }
   0xa   :  { %s1342_s16 = smov 4   ;;  %s21_s19 = sshll.u32 %s1427_s0, 4  ;;  %s22_s19 = int_to_ptr.hbm [resolvable:$true] %s21_s19 }
   0xb   :  { %68 = dma.hbm_to_vmem [thread:$0]  %s61_s10, 1024, %s63_s12, [#allocation9], %s1341_s15, %s1341_s15, %s1342_s16  }
   0xc   :  { %s1343_s20 = smov [#allocation11]   ;;  %s1344_s3 = smov [#allocation2]  }
   0xd   :  { %s88_s21 = sshll.u32 %s1343_s20, 4  ;;  %s23_s22 = sshll.u32 %s1344_s3, 4  ;;  %s89_s21 = int_to_ptr.vmem [resolvable:$true] %s88_s21  ;;  %s24_s22 = int_to_ptr.vmem [resolvable:$true] %s23_s22 }
   0xe   :  { %94 = dma.hbm_to_vmem [thread:$0]  %s87_s1, 2048, %s89_s21, [#allocation12], %s1341_s15, %s1341_s15, %s1342_s16  }
   0xf   :  { %s47_s5 = sshll.u32 %s1429_s2, 4  ;;  %s73_s0 = sshll.u32 %s1431_s4, 4  ;;  %s48_s5 = int_to_ptr.hbm [resolvable:$true] %s47_s5  ;;  %s74_s0 = int_to_ptr.hbm [resolvable:$true] %s73_s0 }
  0x10   :  { %29 = dma.hbm_to_vmem [thread:$0]  %s22_s19, 256, %s24_s22, [#allocation3], %s1338_s29, %s1338_s29, %s1339_s30  }
  0x11   :  { %s1345_s27 = smov [#allocation7]   ;;  %s1346_s8 = smov [#allocation10]  }
  0x12   :  { %s49_s28 = sshll.u32 %s1345_s27, 4  ;;  %s75_s9 = sshll.u32 %s1346_s8, 4  ;;  %s50_s28 = int_to_ptr.vmem [resolvable:$true] %s49_s28  ;;  %s76_s9 = int_to_ptr.vmem [resolvable:$true] %s75_s9 }
  0x13   :  { %55 = dma.hbm_to_vmem [thread:$0]  %s48_s5, 2048, %s50_s28, [#allocation6], %s1341_s15, %s1341_s15, %s1342_s16  }
  0x14   :  { %s100_s2 = sshll.u32 %s1433_s6, 4  ;;  %s1347_s12 = smov [#allocation13]   ;;  %s101_s2 = int_to_ptr.hbm [resolvable:$true] %s100_s2 }
  0x15   :  { %81 = dma.hbm_to_vmem [thread:$0]  %s74_s0, 2048, %s76_s9, [#allocation9], %s1338_s29, %s1338_s29, %s1339_s30  }
  0x16   :  { %s102_s13 = sshll.u32 %s1347_s12, 4  ;;  %s103_s13 = int_to_ptr.vmem [resolvable:$true] %s102_s13 }
  0x17   :  { %105 = dma.hbm_to_vmem [thread:$0]  %s101_s2, 112, %s103_s13, [#allocation12]  }
  0x18   :  { %1327 = dma.done.wait [#allocation3], 256  }
  0x19   :  { %1328 = vsyncadd [#allocation3], 4294967040 }
  0x1a   :  { %1329 = dma.done.wait [#allocation6], 3072  }
  0x1b   :  { %1330 = vsyncadd [#allocation6], 4294964224 }
  0x1c   :  { %1331 = dma.done.wait [#allocation9], 3072  }
  0x1d   :  { %1332 = vsyncadd [#allocation9], 4294964224 }
  0x1e   :  { %1333 = dma.done.wait [#allocation12], 2160  }
  0x1f   :  { %1334 = vsyncadd [#allocation12], 4294965136  ;;  %v824_v0 = vld [vmem:[#allocation5 + $0x30] sm:$0xf]  ;;  %v1063_v1 = vld [vmem:[#allocation5 + $0x34] sm:$0xf0] }
  0x20   :  { %v816_v2 = vld [vmem:[#allocation5 + $0x20] sm:$0xf]  ;;  %v825_v3 = vor.u32 %v1063_v1, %v824_v0  ;;  %v1061_v4 = vld [vmem:[#allocation5 + $0x24] sm:$0xf0]  ;;  %v808_v6 = vld [vmem:[#allocation5 + $0x10] sm:$0xf] }
  0x21   :  { %v817_v5 = vor.u32 %v1061_v4, %v816_v2  ;;  %v1059_v7 = vld [vmem:[#allocation5 + $0x14] sm:$0xf0]  ;;  %v800_v10 = vld [vmem:[#allocation5] sm:$0xf]  ;;  %v1057_v11 = vld [vmem:[#allocation5 + $0x4] sm:$0xf0] }
  0x22   :  { %200 = vmatpush.bf16.msra.mxu1 %v825_v3  ;;  %v1071_v8 = vld [vmem:[#allocation7 + $0x38] sm:$0xff]  ;;  %v809_v9 = vor.u32 %v1059_v7, %v808_v6  ;;  %v1070_v12 = vld [vmem:[#allocation7 + $0x30] sm:$0xff]  ;;  %v801_v15 = vor.u32 %v1057_v11, %v800_v10  ;;  %v1069_v19 = vld [vmem:[#allocation7 + $0x28] sm:$0xff]  ;;  %vm192_vm0 = vcmask 523264   ;;  %s1348_s4 = smov [#allocation14]   ;;  %s782_s15 = sshll.u32 %s1434_s7, 4  ;;  %s783_s15 = int_to_ptr.hbm [resolvable:$true] %s782_s15 }
  0x23   :  { %362 = vmatpush.bf16.msra.mxu2 %v1071_v8  ;;  %v1062_v13 = vld [vmem:[#allocation5 + $0x34] sm:$0xf]  ;;  %v826_v14 = vld [vmem:[#allocation5 + $0x38] sm:$0xf0]  ;;  %v1060_v20 = vld [vmem:[#allocation5 + $0x24] sm:$0xf] }
  0x24   :  { %v135_v16 = vld [vmem:[#allocation2] sm:$0xff]  ;;  %v136_v17 = vld [vmem:[#allocation2 + $0x8] sm:$0xff]  ;;  %v829_v18 = vor.u32 %v1062_v13, %v826_v14  ;;  %v818_v21 = vld [vmem:[#allocation5 + $0x28] sm:$0xf0]  ;;  %s780_s6 = sshll.u32 %s1348_s4, 4  ;;  %s781_s6 = int_to_ptr.vmem [resolvable:$true] %s780_s6 }
  0x25   :  { %v137_v22 = vpack.c.bf16 %v136_v17, %v135_v16  ;;  %v821_v23 = vor.u32 %v1060_v20, %v818_v21  ;;  %v1068_v24 = vld [vmem:[#allocation7 + $0x20] sm:$0xff]  ;;  %v1058_v25 = vld [vmem:[#allocation5 + $0x14] sm:$0xf]  ;;  %v810_v26 = vld [vmem:[#allocation5 + $0x18] sm:$0xf0] }
  0x26   :  { %201 = vmatpush.bf16.msra.mxu1 %v817_v5  ;;  %v813_v27 = vor.u32 %v1058_v25, %v810_v26  ;;  %v1056_v28 = vld [vmem:[#allocation5 + $0x4] sm:$0xf]  ;;  %v802_v29 = vld [vmem:[#allocation5 + $0x8] sm:$0xf0]  ;;  %v1067_v31 = vld [vmem:[#allocation7 + $0x18] sm:$0xff] }
  0x27   :  { %363 = vmatpush.bf16.msra.mxu2 %v1070_v12  ;;  %v805_v30 = vor.u32 %v1056_v28, %v802_v29  ;;  %v1079_v32 = vld [vmem:[#allocation7 + $0x78] sm:$0xff]  ;;  %v1066_v33 = vld [vmem:[#allocation7 + $0x10] sm:$0xff]  ;;  %v1065_v35 = vld [vmem:[#allocation7 + $0x8] sm:$0xff] }
  0x28   :  { %376 = vmatpush.bf16.msra.mxu3 %v1079_v32  ;;  %v1078_v34 = vld [vmem:[#allocation7 + $0x70] sm:$0xff]  ;;  %v1077_v36 = vld [vmem:[#allocation7 + $0x68] sm:$0xff]  ;;  %v1064_v37 = vld [vmem:[#allocation7] sm:$0xff] }
  0x29   :  { %v1076_v38 = vld [vmem:[#allocation7 + $0x60] sm:$0xff]  ;;  %v1075_v39 = vld [vmem:[#allocation7 + $0x58] sm:$0xff]  ;;  %v1074_v40 = vld [vmem:[#allocation7 + $0x50] sm:$0xff] }
  0x2a   :  { %202 = vmatpush.bf16.msra.mxu1 %v809_v9  ;;  %v1073_v41 = vld [vmem:[#allocation7 + $0x48] sm:$0xff]  ;;  %v1072_v42 = vld [vmem:[#allocation7 + $0x40] sm:$0xff]  ;;  %v1087_v60 = vld [vmem:[#allocation8 + $0x38] sm:$0xff] }
  0x2b   :  { %364 = vmatpush.bf16.msra.mxu2 %v1069_v19  ;;  %v146_v43 = vld [vmem:[#allocation13] sm:$0x3]  ;;  %461 = vmatpush.bf16.msra.mxu0 %v1087_v60  ;;  %v1086_v61 = vld [vmem:[#allocation8 + $0x30] sm:$0xff]  ;;  %v1085_v62 = vld [vmem:[#allocation8 + $0x28] sm:$0xff] }
  0x2c   :  { %377 = vmatpush.bf16.msra.mxu3 %v1078_v34  ;;  %v148_v45 = vperm.slane %v146_v43, 0  ;;  %v149_v53 = vperm.slane %v146_v43, 1  ;;  %v1084_v63 = vld [vmem:[#allocation8 + $0x20] sm:$0xff]  ;;  %v1083_v0 = vld [vmem:[#allocation8 + $0x18] sm:$0xff]  ;;  %v1082_v1 = vld [vmem:[#allocation8 + $0x10] sm:$0xff] }
  0x2d   :  { %v1081_v2 = vld [vmem:[#allocation8 + $0x8] sm:$0xff]  ;;  %v1080_v3 = vld [vmem:[#allocation8] sm:$0xff]  ;;  %v986_v4 = vld [vmem:[#allocation10 + $0x70] sm:$0xf] }
  0x2e   :  { %203 = vmatpush.bf16.msra.mxu1 %v801_v15  ;;  %v1103_v5 = vld [vmem:[#allocation10 + $0x74] sm:$0xf0]  ;;  %v1102_v6 = vld [vmem:[#allocation10 + $0x74] sm:$0xf]  ;;  %v988_v8 = vld [vmem:[#allocation10 + $0x78] sm:$0xf0] }
  0x2f   :  { %365 = vmatpush.bf16.msra.mxu2 %v1068_v24  ;;  %462 = vmatpush.bf16.msra.mxu0 %v1086_v61  ;;  %v987_v7 = vor.u32 %v1103_v5, %v986_v4  ;;  %v978_v9 = vld [vmem:[#allocation10 + $0x60] sm:$0xf]  ;;  %v1101_v10 = vld [vmem:[#allocation10 + $0x64] sm:$0xf0]  ;;  %v991_v11 = vor.u32 %v1102_v6, %v988_v8  ;;  %v1100_v12 = vld [vmem:[#allocation10 + $0x64] sm:$0xf] }
  0x30   :  { %378 = vmatpush.bf16.msra.mxu3 %v1077_v36  ;;  %v980_v13 = vld [vmem:[#allocation10 + $0x68] sm:$0xf0]  ;;  %v979_v14 = vor.u32 %v1101_v10, %v978_v9  ;;  %v970_v16 = vld [vmem:[#allocation10 + $0x50] sm:$0xf]  ;;  %v1099_v17 = vld [vmem:[#allocation10 + $0x54] sm:$0xf0] }
  0x31   :  { %830 = vmatmul.msk.bf16.vlgmr.msra.gmra.mxu1 %vm192_vm0, %v137_v22  ;;  %v983_v15 = vor.u32 %v1100_v12, %v980_v13  ;;  %v972_v19 = vld [vmem:[#allocation10 + $0x58] sm:$0xf0]  ;;  %v971_v20 = vor.u32 %v1099_v17, %v970_v16  ;;  %v1096_v24 = vld [vmem:[#allocation10 + $0x44] sm:$0xf]  ;;  %v964_v25 = vld [vmem:[#allocation10 + $0x48] sm:$0xf0] }
  0x32   :  { %214 = vmatpush.bf16.msrb.mxu1 %v829_v18  ;;  %v1098_v18 = vld [vmem:[#allocation10 + $0x54] sm:$0xf]  ;;  %v967_v28 = vor.u32 %v1096_v24, %v964_v25  ;;  %v1088_v60 = vld [vmem:[#allocation10 + $0x4] sm:$0xf]  ;;  %v1109_v4 = vld [vmem:[#allocation11 + $0x28] sm:$0xff] }
  0x33   :  { %366 = vmatpush.bf16.msra.mxu2 %v1067_v31  ;;  %463 = vmatpush.bf16.msra.mxu0 %v1085_v62  ;;  %v975_v21 = vor.u32 %v1098_v18, %v972_v19  ;;  %v932_v62 = vld [vmem:[#allocation10 + $0x8] sm:$0xf0]  ;;  %v1108_v6 = vld [vmem:[#allocation11 + $0x20] sm:$0xff]  ;;  %v1106_v17 = vld [vmem:[#allocation11 + $0x10] sm:$0xff] }
  0x34   :  { %379 = vmatpush.bf16.msra.mxu3 %v1076_v38  ;;  %v1117_v5 = vld [vmem:[#allocation11 + $0x68] sm:$0xff]  ;;  %v1133_v8 = vld [vmem:[#allocation13 + $0x3] ss:$0 sm:$0xff]  ;;  %v1115_v18 = vld [vmem:[#allocation11 + $0x58] sm:$0xff] }
  0x35   :  { %v1116_v16 = vld [vmem:[#allocation11 + $0x60] sm:$0xff]  ;;  %v1105_v19 = vld [vmem:[#allocation11 + $0x8] sm:$0xff] }
  0x36   :  { %215 = vmatpush.bf16.msrb.mxu1 %v821_v23  ;;  %v1097_v23 = vld [vmem:[#allocation10 + $0x44] sm:$0xf0]  ;;  %v494_v24 = vld [vmem:[#allocation13 + $0x4] sm:$0x3] }
  0x37   :  { %367 = vmatpush.bf16.msra.mxu2 %v1066_v33  ;;  %464 = vmatpush.bf16.msra.mxu0 %v1084_v63  ;;  %v935_v63 = vor.u32 %v1088_v60, %v932_v62 }
  0x38   :  { %380 = vmatpush.bf16.msra.mxu3 %v1075_v39 }
  0x3a   :  { %216 = vmatpush.bf16.msrb.mxu1 %v813_v27 }
  0x3b   :  { %368 = vmatpush.bf16.msra.mxu2 %v1065_v35  ;;  %465 = vmatpush.bf16.msra.mxu0 %v1083_v0  ;;  %v1111_v0 = vld [vmem:[#allocation11 + $0x38] sm:$0xff] }
  0x3c   :  { %381 = vmatpush.bf16.msra.mxu3 %v1074_v40  ;;  %v954_v40 = vld [vmem:[#allocation10 + $0x30] sm:$0xf] }
  0x3e   :  { %217 = vmatpush.bf16.msrb.mxu1 %v805_v30  ;;  %v1132_v30 = vld [vmem:[#allocation13 + $0x2] ss:$0 sm:$0xff] }
  0x3f   :  { %369 = vmatpush.bf16.msra.mxu2 %v1064_v37  ;;  %466 = vmatpush.bf16.msra.mxu0 %v1082_v1  ;;  %v1119_v1 = vld [vmem:[#allocation11 + $0x78] sm:$0xff] }
  0x40   :  { %382 = vmatpush.bf16.msra.mxu3 %v1073_v41  ;;  %v1095_v41 = vld [vmem:[#allocation10 + $0x34] sm:$0xf0] }
  0x41   :  { %831 = vmatmul.msk.bf16.vlgmr.msrb.gmra.mxu1 %vm192_vm0, %v137_v22  ;;  %v962_v22 = vld [vmem:[#allocation10 + $0x40] sm:$0xf]  ;;  %v955_v43 = vor.u32 %v1095_v41, %v954_v40  ;;  %v1134_v41 = vld [vmem:[#allocation13 + $0x6] ss:$0 sm:$0xff] }
  0x42   :  { %580 = vmatpush.bf16.msra.mxu1 %v987_v7  ;;  %v963_v27 = vor.u32 %v1097_v23, %v962_v22  ;;  %v1113_v22 = vld [vmem:[#allocation11 + $0x48] sm:$0xff]  ;;  %v1112_v23 = vld [vmem:[#allocation11 + $0x40] sm:$0xff] }
  0x43   :  { %467 = vmatpush.bf16.msra.mxu0 %v1081_v2  ;;  %594 = vmatpush.bf16.msrb.mxu2 %v991_v11  ;;  %v1110_v2 = vld [vmem:[#allocation11 + $0x30] sm:$0xff] }
  0x44   :  { %383 = vmatpush.bf16.msra.mxu3 %v1072_v42  ;;  %v1094_v42 = vld [vmem:[#allocation10 + $0x34] sm:$0xf] }
  0x46   :  { %581 = vmatpush.bf16.msra.mxu1 %v979_v14 }
  0x47   :  { %468 = vmatpush.bf16.msra.mxu0 %v1080_v3  ;;  %595 = vmatpush.bf16.msrb.mxu2 %v983_v15  ;;  %v1118_v3 = vld [vmem:[#allocation11 + $0x70] sm:$0xff]  ;;  %v1107_v15 = vld [vmem:[#allocation11 + $0x18] sm:$0xff] }
  0x48   :  { %746 = vmatpush.bf16.msrb.mxu3 %v1111_v0 }
  0x4a   :  { %582 = vmatpush.bf16.msra.mxu1 %v971_v20  ;;  %v1114_v20 = vld [vmem:[#allocation11 + $0x50] sm:$0xff] }
  0x4b   :  { %596 = vmatpush.bf16.msrb.mxu2 %v975_v21  ;;  %760 = vmatpush.bf16.msrb.mxu0 %v1119_v1  ;;  %v1104_v21 = vld [vmem:[#allocation11] sm:$0xff] }
  0x4c   :  { %747 = vmatpush.bf16.msrb.mxu3 %v1110_v2 }
  0x4e   :  { %583 = vmatpush.bf16.msra.mxu1 %v963_v27 }
  0x4f   :  { %597 = vmatpush.bf16.msrb.mxu2 %v967_v28  ;;  %761 = vmatpush.bf16.msrb.mxu0 %v1118_v3 }
  0x50   :  { %748 = vmatpush.bf16.msrb.mxu3 %v1109_v4 }
  0x52   :  { %584 = vmatpush.bf16.msra.mxu1 %v955_v43 }
  0x53   :  { %762 = vmatpush.bf16.msrb.mxu0 %v1117_v5 }
  0x54   :  { %749 = vmatpush.bf16.msrb.mxu3 %v1108_v6 }
  0x57   :  { %763 = vmatpush.bf16.msrb.mxu0 %v1116_v16 }
  0x58   :  { %750 = vmatpush.bf16.msrb.mxu3 %v1107_v15 }
  0x5b   :  { %764 = vmatpush.bf16.msrb.mxu0 %v1115_v18 }
  0x5c   :  { %751 = vmatpush.bf16.msrb.mxu3 %v1106_v17 }
  0x5f   :  { %765 = vmatpush.bf16.msrb.mxu0 %v1114_v20 }
  0x60   :  { %752 = vmatpush.bf16.msrb.mxu3 %v1105_v19 }
  0x63   :  { %766 = vmatpush.bf16.msrb.mxu0 %v1113_v22 }
  0x64   :  { %753 = vmatpush.bf16.msrb.mxu3 %v1104_v21 }
  0x67   :  { %767 = vmatpush.bf16.msrb.mxu0 %v1112_v23 }
  0xae   :  { %v205_v44 = vpop.f32.mrf.mxu1 }
  0xaf   :  { %v206_v46 = vadd.f32 %v205_v44, %v148_v45  ;;  %v956_v44 = vld [vmem:[#allocation10 + $0x38] sm:$0xf0] }
  0xb1   :  { %v224_v49 = vmax.f32 %v206_v46, 0.0  ;;  %v946_v46 = vld [vmem:[#allocation10 + $0x20] sm:$0xf] }
  0xb6   :  { %v207_v47 = vpop.f32.mrf.mxu1 }
  0xb7   :  { %v208_v48 = vadd.f32 %v207_v47, %v148_v45  ;;  %v959_v45 = vor.u32 %v1094_v42, %v956_v44  ;;  %v1093_v47 = vld [vmem:[#allocation10 + $0x24] sm:$0xf0] }
  0xb9   :  { %v226_v50 = vmax.f32 %v208_v48, 0.0  ;;  %598 = vmatpush.bf16.msrb.mxu2 %v959_v45  ;;  %v1092_v48 = vld [vmem:[#allocation10 + $0x24] sm:$0xf] }
  0xbb   :  { %v228_v51 = vpack.c.bf16 %v226_v50, %v224_v49  ;;  %v947_v49 = vor.u32 %v1093_v47, %v946_v46  ;;  %v948_v50 = vld [vmem:[#allocation10 + $0x28] sm:$0xf0] }
  0xbd   :  { %370 = vmatmul.bf16.vlgmr.msra.gmra.mxu2 %v228_v51  ;;  %v951_v51 = vor.u32 %v1092_v48, %v948_v50  ;;  %585 = vmatpush.bf16.msra.mxu1 %v947_v49 }
  0xbe   :  { %v219_v52 = vpop.f32.mrf.mxu1 }
  0xbf   :  { %v220_v54 = vadd.f32 %v219_v52, %v149_v53  ;;  %599 = vmatpush.bf16.msrb.mxu2 %v951_v51  ;;  %v938_v52 = vld [vmem:[#allocation10 + $0x10] sm:$0xf] }
  0xc1   :  { %v225_v57 = vmax.f32 %v220_v54, 0.0  ;;  %v1090_v54 = vld [vmem:[#allocation10 + $0x14] sm:$0xf] }
  0xc6   :  { %v221_v55 = vpop.f32.mrf.mxu1 }
  0xc7   :  { %v222_v56 = vadd.f32 %v221_v55, %v149_v53  ;;  %v1091_v53 = vld [vmem:[#allocation10 + $0x14] sm:$0xf0] }
  0xc8   :  { %v939_v55 = vor.u32 %v1091_v53, %v938_v52 }
  0xc9   :  { %v227_v58 = vmax.f32 %v222_v56, 0.0  ;;  %v940_v56 = vld [vmem:[#allocation10 + $0x18] sm:$0xf0] }
  0xca   :  { %586 = vmatpush.bf16.msra.mxu1 %v939_v55 }
  0xcb   :  { %v229_v59 = vpack.c.bf16 %v227_v58, %v225_v57  ;;  %v943_v57 = vor.u32 %v1090_v54, %v940_v56  ;;  %v930_v58 = vld [vmem:[#allocation10] sm:$0xf] }
  0xcd   :  { %384 = vmatmul.bf16.vlgmr.msra.gmra.mxu3 %v229_v59  ;;  %600 = vmatpush.bf16.msrb.mxu2 %v943_v57  ;;  %v1089_v59 = vld [vmem:[#allocation10 + $0x4] sm:$0xf0] }
  0xce   :  { %v931_v61 = vor.u32 %v1089_v59, %v930_v58 }
  0xd0   :  { %587 = vmatpush.bf16.msra.mxu1 %v931_v61 }
  0xd1   :  { %601 = vmatpush.bf16.msrb.mxu2 %v935_v63 }
 0x140   :  { %v371_v26 = vpop.f32.mrf.mxu2 }
 0x141   :  { %v372_v32 = vadd.f32 %v1132_v30, %v371_v26  ;;  %v496_v26 = vperm.slane %v494_v24, 0 }
 0x148   :  { %v373_v31 = vpop.f32.mrf.mxu2 }
 0x149   :  { %v374_v33 = vadd.f32 %v1132_v30, %v373_v31  ;;  %v497_v30 = vperm.slane %v494_v24, 1 }
 0x150   :  { %v385_v29 = vpop.f32.mrf.mxu3 }
 0x151   :  { %v386_v34 = vadd.f32 %v385_v29, %v372_v32 }
 0x153   :  { %v390_v37 = vmax.f32 %v386_v34, 0.0 }
 0x158   :  { %v387_v35 = vpop.f32.mrf.mxu3 }
 0x159   :  { %v388_v36 = vadd.f32 %v387_v35, %v374_v33 }
 0x15b   :  { %v391_v38 = vmax.f32 %v388_v36, 0.0 }
 0x15d   :  { %v392_v39 = vpack.c.bf16 %v391_v38, %v390_v37 }
 0x15f   :  { %469 = vmatmul.bf16.vlgmr.msra.gmra.mxu0 %v392_v39 }
 0x1dc   :  { %v470_v7 = vpop.f32.mrf.mxu0 }
 0x1dd   :  { %v471_v9 = vadd.f32 %v1133_v8, %v470_v7 }
 0x1df   :  { %v475_v12 = vmax.f32 %v471_v9, 0.0 }
 0x1e4   :  { %v472_v10 = vpop.f32.mrf.mxu0 }
 0x1e5   :  { %v473_v11 = vadd.f32 %v1133_v8, %v472_v10 }
 0x1e7   :  { %v476_v13 = vmax.f32 %v473_v11, 0.0 }
 0x1e9   :  { %v477_v14 = vpack.c.bf16 %v476_v13, %v475_v12 }
 0x1eb   :  { %588 = vmatmul.bf16.vlgmr.msra.gmra.mxu1 %v477_v14  ;;  %602 = vmatmul.bf16.vlgmr.msrb.gmra.mxu2 %v477_v14 }
 0x268   :  { %v589_v25 = vpop.f32.mrf.mxu1 }
 0x269   :  { %v590_v28 = vadd.f32 %v589_v25, %v496_v26 }
 0x26b   :  { %v608_v32 = vmax.f32 %v590_v28, 0.0 }
 0x26e   :  { %v603_v27 = vpop.f32.mrf.mxu2 }
 0x26f   :  { %v604_v34 = vadd.f32 %v603_v27, %v497_v30 }
 0x270   :  { %v591_v29 = vpop.f32.mrf.mxu1 }
 0x271   :  { %v592_v31 = vadd.f32 %v591_v29, %v496_v26  ;;  %v609_v38 = vmax.f32 %v604_v34, 0.0 }
 0x273   :  { %v610_v33 = vmax.f32 %v592_v31, 0.0 }
 0x275   :  { %v612_v35 = vpack.c.bf16 %v610_v33, %v608_v32 }
 0x276   :  { %v605_v36 = vpop.f32.mrf.mxu2 }
 0x277   :  { %v606_v37 = vadd.f32 %v605_v36, %v497_v30  ;;  %754 = vmatmul.bf16.vlgmr.msrb.gmra.mxu3 %v612_v35 }
 0x279   :  { %v611_v39 = vmax.f32 %v606_v37, 0.0 }
 0x27b   :  { %v613_v40 = vpack.c.bf16 %v611_v39, %v609_v38 }
 0x27d   :  { %768 = vmatmul.bf16.vlgmr.msrb.gmra.mxu0 %v613_v40 }
 0x2fa   :  { %v755_v42 = vpop.f32.mrf.mxu3  ;;  %v769_v43 = vpop.f32.mrf.mxu0 }
 0x2fb   :  { %v756_v44 = vadd.f32 %v1134_v41, %v755_v42 }
 0x2fd   :  { %v770_v45 = vadd.f32 %v769_v43, %v756_v44 }
 0x2ff   :  { %774 = vst [vmem:[#allocation14] sm:$0xff] %v770_v45 }
 0x302   :  { %v757_v46 = vpop.f32.mrf.mxu3  ;;  %v771_v48 = vpop.f32.mrf.mxu0 }
 0x303   :  { %v758_v47 = vadd.f32 %v1134_v41, %v757_v46 }
 0x305   :  { %v772_v49 = vadd.f32 %v771_v48, %v758_v47 }
 0x307   :  { %775 = vst [vmem:[#allocation14 + $0x8] sm:$0xff] %v772_v49 }
 0x308   :  { %788 = dma.vmem_to_hbm [thread:$0]  %s781_s6, 256, %s783_s15, [#allocation4], %s1338_s29, %s1338_s29, %s1339_s30  }
 0x309   :  { %1335 = dma.done.wait [#allocation4], 256  }
 0x30a   :  { %1336 = vsyncadd [#allocation4], 4294967040 }
 0x30b   :  { %793 = vsyncpa [#allocation3], 1 }
 0x30c   :  { %794 = vsyncpa [#allocation6], 1 }
 0x30d   :  { %795 = vsyncpa [#allocation9], 1 }
 0x30e   :  { %796 = vsyncpa [#allocation12], 1 }
 0x30f   :  { %797 = vsyncpa [#allocation4], 1 }

</bundles_post_ra>
